<compile_context>
chip_gen: v6e
topology: v6e:2x2x1
jax: 0.10.0
libtpu: 0.0.40
codegen_flags: <defaults>
</compile_context>

<pallas_src>
import jax
import jax.numpy as jnp
from jax import lax
from jax.experimental import pallas as pl
from jax.experimental.pallas import tpu as pltpu


def _round_up(x, m):
    return ((x + m - 1) // m) * m


# ----------------------------------------------------------------------------
# Pallas kernel 1: tiled matmul + bias + ReLU  (the conv hot path)
# ----------------------------------------------------------------------------
def _matmul_bias_relu_kernel(a_ref, w_ref, b_ref, o_ref):
    # a:(tm,Kp)  w:(Kp,Np)  b:(1,Np)  o:(tm,Np)   (Np lane-dense, multiple of 128)
    acc = jnp.dot(a_ref[...], w_ref[...], preferred_element_type=jnp.float32)
    o_ref[...] = jnp.maximum(acc + b_ref[...], 0.0).astype(o_ref.dtype)


def matmul_bias_relu(a, w, b, *, tm_target=512):
    """relu(a @ w + b).  a:(M,K)  w:(K,N)  b:(N,).

    Tiled over M (grid axis "parallel"); N is zero-padded to a multiple of 128
    so the output block is lane-dense; K is zero-padded to a multiple of 8 and
    kept as one full block (K = Cin*k*k is small for these convs).  Weight and
    bias blocks have constant index_maps so they stay resident in VMEM.
    """
    M, K = a.shape
    K2, N = w.shape
    assert K == K2
    Kp = _round_up(K, 8)
    Np = _round_up(N, 128)
    tm = min(tm_target, _round_up(M, 8))
    Mp = _round_up(M, tm)

    a_p = jnp.pad(a, ((0, Mp - M), (0, Kp - K)))
    w_p = jnp.pad(w, ((0, Kp - K), (0, Np - N)))
    b_p = jnp.pad(b.reshape(1, N), ((0, 0), (0, Np - N)))

    # NOTE: on v6e/v7x, casting a_p/w_p to bfloat16 here (keeping the f32
    # accumulator via preferred_element_type) gives ~2-3x on the MXU portion;
    # kept in f32 to preserve exact reference semantics.
    out = pl.pallas_call(
        _matmul_bias_relu_kernel,
        out_shape=jax.ShapeDtypeStruct((Mp, Np), jnp.float32),
        grid=(Mp // tm,),
        in_specs=[
            pl.BlockSpec((tm, Kp), lambda i: (i, 0)),
            pl.BlockSpec((Kp, Np), lambda i: (0, 0)),   # resident weight tile
            pl.BlockSpec((1, Np), lambda i: (0, 0)),    # resident bias tile
        ],
        out_specs=pl.BlockSpec((tm, Np), lambda i: (i, 0)),
        compiler_params=pltpu.CompilerParams(
            dimension_semantics=("parallel",)),
    )(a_p, w_p, b_p)
    return out[:M, :N]


# ----------------------------------------------------------------------------
# Pallas kernel 2: adaptive instance normalization on NHWC blocks
# ----------------------------------------------------------------------------
def _adain_kernel(c_ref, s_ref, o_ref):
    """Block layout (bn, H*W, C): per-(n, c) stats reduce over axis 1.

    Matches PyTorch calc_mean_std: mean over spatial, unbiased variance
    (divide by HW-1), eps added to the variance before sqrt.  The divide by
    c_std is folded into a single rsqrt-based scale.
    """
    eps = 1e-5
    c = c_ref[...]
    s = s_ref[...]
    hw = c.shape[1]

    c_mean = jnp.mean(c, axis=1, keepdims=True)
    c_var = jnp.sum((c - c_mean) ** 2, axis=1, keepdims=True) / (hw - 1) + eps
    s_mean = jnp.mean(s, axis=1, keepdims=True)
    s_var = jnp.sum((s - s_mean) ** 2, axis=1, keepdims=True) / (hw - 1) + eps

    scale = jnp.sqrt(s_var) * lax.rsqrt(c_var)          # s_std / c_std
    o_ref[...] = (c - c_mean) * scale + s_mean


def adain_nhwc(c, s):
    """c, s: (N, H, W, C) NHWC.  Returns NHWC."""
    N, H, W, C = c.shape
    assert H * W > 1, "AdaIN unbiased variance needs H*W > 1"
    HW = H * W
    c2 = c.reshape(N, HW, C)
    s2 = s.reshape(N, HW, C)

    # Batch-tile: keep per-step block footprint modest (<= ~4 MiB per operand).
    per_batch_bytes = HW * C * 4
    bn = max(1, min(N, (4 << 20) // max(per_batch_bytes, 1)))
    while N % bn != 0:
        bn -= 1

    out = pl.pallas_call(
        _adain_kernel,
        out_shape=jax.ShapeDtypeStruct((N, HW, C), jnp.float32),
        grid=(N // bn,),
        in_specs=[
            pl.BlockSpec((bn, HW, C), lambda i: (i, 0, 0)),
            pl.BlockSpec((bn, HW, C), lambda i: (i, 0, 0)),
        ],
        out_specs=pl.BlockSpec((bn, HW, C), lambda i: (i, 0, 0)),
        compiler_params=pltpu.CompilerParams(
            dimension_semantics=("parallel",)),
    )(c2, s2)
    return out.reshape(N, H, W, C)


# ----------------------------------------------------------------------------
# Conv glue: reflection pad + NHWC im2col (plain JAX), matmul in Pallas.
# ----------------------------------------------------------------------------
def conv_layer_relu_nhwc(x, weight, bias, stride):
    """ReflectionPad2d(k//2) -> Conv2d(k, stride) -> ReLU on NHWC input.

    x: (N, H, W, Cin); weight: PyTorch layout (Cout, Cin, kh, kw).
    Returns NHWC (N, Ho, Wo, Cout).
    """
    Cout, Cin, kh, kw = weight.shape
    pad = kh // 2
    xp = jnp.pad(x, ((0, 0), (pad, pad), (pad, pad), (0, 0)), mode="reflect")
    N, Hp, Wp, _ = xp.shape
    Ho = (Hp - kh) // stride + 1
    Wo = (Wp - kw) // stride + 1

    # NHWC im2col, K order = (tap i, tap j, channel) — no big transpose needed.
    taps = []
    for i in range(kh):
        for j in range(kw):
            taps.append(xp[:, i:i + stride * Ho:stride,
                           j:j + stride * Wo:stride, :])
    patches = jnp.concatenate(taps, axis=-1)                  # (N,Ho,Wo,kh*kw*Cin)
    patches = patches.reshape(N * Ho * Wo, kh * kw * Cin)

    # Weight re-ordered to match (i, j, c) K-order: (kh, kw, Cin, Cout).
    w_r = jnp.transpose(weight, (2, 3, 1, 0)).reshape(kh * kw * Cin, Cout)

    out = matmul_bias_relu(patches, w_r, bias)                # (N*Ho*Wo, Cout)
    return out.reshape(N, Ho, Wo, Cout)


# ----------------------------------------------------------------------------
# SplattingBlock_1 forward
# ----------------------------------------------------------------------------
def splatting_block_1(c, s, top_path, params):
    """Inputs/outputs in PyTorch NCHW; all internal compute in NHWC."""
    N = c.shape[0]
    c_n = jnp.transpose(c, (0, 2, 3, 1))
    s_n = jnp.transpose(s, (0, 2, 3, 1))
    top_n = jnp.transpose(top_path, (0, 2, 3, 1))

    # conv1 (stride 2) on c and s in one batched call (shared weights).
    x = jnp.concatenate([c_n, s_n], axis=0)                   # (2N, H, W, Cin)
    x = conv_layer_relu_nhwc(x, params["w1"], params["b1"], stride=2)
    c1, s1 = x[:N], x[N:]

    # AdaIN(c1, s1), concat with top_path on the channel (last) axis, conv2.
    c2 = adain_nhwc(c1, s1)
    c2 = jnp.concatenate([c2, top_n], axis=-1)
    c3 = conv_layer_relu_nhwc(c2, params["w2"], params["b2"], stride=1)

    return jnp.transpose(c3, (0, 3, 1, 2)), jnp.transpose(s1, (0, 3, 1, 2))


def init_params(key, in_channels, out_channels, top_path_channel):
    k1, k2, k3, k4 = jax.random.split(key, 4)
    w1 = jax.random.normal(k1, (out_channels, in_channels, 3, 3),
                           dtype=jnp.float32) * 0.1
    b1 = jax.random.normal(k2, (out_channels,), dtype=jnp.float32) * 0.1
    w2 = jax.random.normal(
        k3, (out_channels, out_channels + top_path_channel, 3, 3),
        dtype=jnp.float32) * 0.1
    b2 = jax.random.normal(k4, (out_channels,), dtype=jnp.float32) * 0.1
    return {"w1": w1, "b1": b1, "w2": w2, "b2": b2}


if __name__ == "__main__":
    # Small shapes: batch=2, in_channels=4, out_channels=8, top_path_channel=4,
    # spatial=16.  conv1 stride 2 -> spatial 8, so top_path is (2, 4, 8, 8).
    key = jax.random.PRNGKey(0)
    kc, ks, kt, kp = jax.random.split(key, 4)

    N, Cin, H, W = 2, 4, 16, 16
    Cout, Ctop = 8, 4

    c = jax.random.normal(kc, (N, Cin, H, W), dtype=jnp.float32)
    s = jax.random.normal(ks, (N, Cin, H, W), dtype=jnp.float32)
    top_path = jax.random.normal(kt, (N, Ctop, H // 2, W // 2), dtype=jnp.float32)

    params = init_params(kp, Cin, Cout, Ctop)

    fwd = jax.jit(splatting_block_1)
    c_out, s_out = fwd(c, s, top_path, params)
    jax.block_until_ready((c_out, s_out))

    assert c_out.shape == (N, Cout, H // 2, W // 2), c_out.shape
    assert s_out.shape == (N, Cout, H // 2, W // 2), s_out.shape
    assert jnp.all(jnp.isfinite(c_out)) and jnp.all(jnp.isfinite(s_out))
    print("KERNEL_OK")
</pallas_src>

<mosaic_0001>
module attributes {stable_mosaic.version = 11 : i64} {
  func.func @_matmul_bias_relu_kernel(%arg0: i32, %arg1: memref<256x40xf32, #tpu.memory_space<vmem>>, %arg2: memref<40x128xf32, #tpu.memory_space<vmem>>, %arg3: memref<1x128xf32, #tpu.memory_space<vmem>>, %arg4: memref<256x128xf32, #tpu.memory_space<vmem>>) attributes {dimension_semantics = [#tpu.dimension_semantics<parallel>], iteration_bounds = array<i64: 1>, scalar_prefetch = 0 : i64, scratch_operands = 0 : i64, tpu.core_type = #tpu.core_type<tc>, window_params = [{transform_indices = @transform_0, window_bounds = array<i64: 256, 40>}, {pipeline_mode = #tpu.pipeline_mode<synchronous>, transform_indices = @transform_1, window_bounds = array<i64: 40, 128>}, {pipeline_mode = #tpu.pipeline_mode<synchronous>, transform_indices = @transform_2, window_bounds = array<i64: 1, 128>}, {transform_indices = @transform_3, window_bounds = array<i64: 256, 128>}]} {
    %c0 = arith.constant 0 : index
    %c0_0 = arith.constant 0 : index
    %0 = vector.load %arg1[%c0, %c0_0] : memref<256x40xf32, #tpu.memory_space<vmem>>, vector<256x40xf32>
    %c0_1 = arith.constant 0 : index
    %c0_2 = arith.constant 0 : index
    %1 = vector.load %arg2[%c0_1, %c0_2] : memref<40x128xf32, #tpu.memory_space<vmem>>, vector<40x128xf32>
    %cst = arith.constant dense<0.000000e+00> : vector<256x128xf32>
    %2 = tpu.matmul %0, %1, %cst {dimension_numbers = #tpu.dot_dimension_numbers<[1], [0], [0], [1], [0, 0, 1, 1], [], []>} : vector<256x40xf32>, vector<40x128xf32>, vector<256x128xf32> -> vector<256x128xf32>
    %c0_3 = arith.constant 0 : index
    %c0_4 = arith.constant 0 : index
    %3 = vector.load %arg3[%c0_3, %c0_4] : memref<1x128xf32, #tpu.memory_space<vmem>>, vector<1x128xf32>
    %4 = vector.broadcast %3 : vector<1x128xf32> to vector<256x128xf32>
    %5 = arith.addf %2, %4 : vector<256x128xf32>
    %cst_5 = arith.constant 0.000000e+00 : f32
    %6 = vector.broadcast %cst_5 : f32 to vector<256x128xf32>
    %7 = arith.maximumf %5, %6 : vector<256x128xf32>
    %c0_6 = arith.constant 0 : index
    %c0_7 = arith.constant 0 : index
    %8 = vector.load %arg4[%c0_6, %c0_7] : memref<256x128xf32, #tpu.memory_space<vmem>>, vector<256x128xf32>
    tpu.vector_store %arg4[%c0_6, %c0_7], %7 {strides = array<i32>} : memref<256x128xf32, #tpu.memory_space<vmem>>, vector<256x128xf32>,
    return
  }
  func.func @transform_0(%arg0: i32) -> (i32, i32) {
    %c0_i32 = arith.constant 0 : i32
    %c0_i32_0 = arith.constant 0 : i32
    return %arg0, %c0_i32 : i32, i32
  }
  func.func @transform_1(%arg0: i32) -> (i32, i32) {
    %c0_i32 = arith.constant 0 : i32
    %c0_i32_0 = arith.constant 0 : i32
    %c0_i32_1 = arith.constant 0 : i32
    return %c0_i32, %c0_i32_0 : i32, i32
  }
  func.func @transform_2(%arg0: i32) -> (i32, i32) {
    %c0_i32 = arith.constant 0 : i32
    %c0_i32_0 = arith.constant 0 : i32
    %c0_i32_1 = arith.constant 0 : i32
    return %c0_i32, %c0_i32_0 : i32, i32
  }
  func.func @transform_3(%arg0: i32) -> (i32, i32) {
    %c0_i32 = arith.constant 0 : i32
    %c0_i32_0 = arith.constant 0 : i32
    return %arg0, %c0_i32 : i32, i32
  }
}

module attributes {stable_mosaic.version = 11 : i64} {
  func.func @_adain_kernel(%arg0: i32, %arg1: memref<2x64x8xf32, #tpu.memory_space<vmem>>, %arg2: memref<2x64x8xf32, #tpu.memory_space<vmem>>, %arg3: memref<2x64x8xf32, #tpu.memory_space<vmem>>) attributes {dimension_semantics = [#tpu.dimension_semantics<parallel>], iteration_bounds = array<i64: 1>, scalar_prefetch = 0 : i64, scratch_operands = 0 : i64, tpu.core_type = #tpu.core_type<tc>, window_params = [{transform_indices = @transform_0, window_bounds = array<i64: 2, 64, 8>}, {transform_indices = @transform_1, window_bounds = array<i64: 2, 64, 8>}, {transform_indices = @transform_2, window_bounds = array<i64: 2, 64, 8>}]} {
    %c0 = arith.constant 0 : index
    %c0_0 = arith.constant 0 : index
    %c0_1 = arith.constant 0 : index
    %0 = vector.load %arg1[%c0, %c0_0, %c0_1] : memref<2x64x8xf32, #tpu.memory_space<vmem>>, vector<2x64x8xf32>
    %c0_2 = arith.constant 0 : index
    %c0_3 = arith.constant 0 : index
    %c0_4 = arith.constant 0 : index
    %1 = vector.load %arg2[%c0_2, %c0_3, %c0_4] : memref<2x64x8xf32, #tpu.memory_space<vmem>>, vector<2x64x8xf32>
    %cst = arith.constant dense<0.000000e+00> : vector<2x8xf32>
    %2 = vector.multi_reduction <add>, %0, %cst [1] : vector<2x64x8xf32> to vector<2x8xf32>
    %3 = vector.shape_cast %2 : vector<2x8xf32> to vector<2x1x8xf32>
    %cst_5 = arith.constant 6.400000e+01 : f32
    %4 = vector.broadcast %cst_5 : f32 to vector<2x1x8xf32>
    %5 = arith.divf %3, %4 : vector<2x1x8xf32>
    %6 = vector.broadcast %5 : vector<2x1x8xf32> to vector<2x64x8xf32>
    %7 = arith.subf %0, %6 : vector<2x64x8xf32>
    %8 = arith.mulf %7, %7 : vector<2x64x8xf32>
    %cst_6 = arith.constant dense<0.000000e+00> : vector<2x8xf32>
    %9 = vector.multi_reduction <add>, %8, %cst_6 [1] : vector<2x64x8xf32> to vector<2x8xf32>
    %10 = vector.shape_cast %9 : vector<2x8xf32> to vector<2x1x8xf32>
    %cst_7 = arith.constant 6.300000e+01 : f32
    %11 = vector.broadcast %cst_7 : f32 to vector<2x1x8xf32>
    %12 = arith.divf %10, %11 : vector<2x1x8xf32>
    %cst_8 = arith.constant 9.99999974E-6 : f32
    %13 = vector.broadcast %cst_8 : f32 to vector<2x1x8xf32>
    %14 = arith.addf %12, %13 : vector<2x1x8xf32>
    %cst_9 = arith.constant dense<0.000000e+00> : vector<2x8xf32>
    %15 = vector.multi_reduction <add>, %1, %cst_9 [1] : vector<2x64x8xf32> to vector<2x8xf32>
    %16 = vector.shape_cast %15 : vector<2x8xf32> to vector<2x1x8xf32>
    %cst_10 = arith.constant 6.400000e+01 : f32
    %17 = vector.broadcast %cst_10 : f32 to vector<2x1x8xf32>
    %18 = arith.divf %16, %17 : vector<2x1x8xf32>
    %19 = vector.broadcast %18 : vector<2x1x8xf32> to vector<2x64x8xf32>
    %20 = arith.subf %1, %19 : vector<2x64x8xf32>
    %21 = arith.mulf %20, %20 : vector<2x64x8xf32>
    %cst_11 = arith.constant dense<0.000000e+00> : vector<2x8xf32>
    %22 = vector.multi_reduction <add>, %21, %cst_11 [1] : vector<2x64x8xf32> to vector<2x8xf32>
    %23 = vector.shape_cast %22 : vector<2x8xf32> to vector<2x1x8xf32>
    %cst_12 = arith.constant 6.300000e+01 : f32
    %24 = vector.broadcast %cst_12 : f32 to vector<2x1x8xf32>
    %25 = arith.divf %23, %24 : vector<2x1x8xf32>
    %cst_13 = arith.constant 9.99999974E-6 : f32
    %26 = vector.broadcast %cst_13 : f32 to vector<2x1x8xf32>
    %27 = arith.addf %25, %26 : vector<2x1x8xf32>
    %28 = math.sqrt %27 : vector<2x1x8xf32>
    %29 = math.rsqrt %14 : vector<2x1x8xf32>
    %30 = arith.mulf %28, %29 : vector<2x1x8xf32>
    %31 = vector.broadcast %5 : vector<2x1x8xf32> to vector<2x64x8xf32>
    %32 = arith.subf %0, %31 : vector<2x64x8xf32>
    %33 = vector.broadcast %30 : vector<2x1x8xf32> to vector<2x64x8xf32>
    %34 = arith.mulf %32, %33 : vector<2x64x8xf32>
    %35 = vector.broadcast %18 : vector<2x1x8xf32> to vector<2x64x8xf32>
    %36 = arith.addf %34, %35 : vector<2x64x8xf32>
    %c0_14 = arith.constant 0 : index
    %c0_15 = arith.constant 0 : index
    %c0_16 = arith.constant 0 : index
    %37 = vector.load %arg3[%c0_14, %c0_15, %c0_16] : memref<2x64x8xf32, #tpu.memory_space<vmem>>, vector<2x64x8xf32>
    tpu.vector_store %arg3[%c0_14, %c0_15, %c0_16], %36 {strides = array<i32>} : memref<2x64x8xf32, #tpu.memory_space<vmem>>, vector<2x64x8xf32>,
    return
  }
  func.func @transform_0(%arg0: i32) -> (i32, i32, i32) {
    %c0_i32 = arith.constant 0 : i32
    %c0_i32_0 = arith.constant 0 : i32
    %c0_i32_1 = arith.constant 0 : i32
    return %arg0, %c0_i32, %c0_i32_0 : i32, i32, i32
  }
  func.func @transform_1(%arg0: i32) -> (i32, i32, i32) {
    %c0_i32 = arith.constant 0 : i32
    %c0_i32_0 = arith.constant 0 : i32
    %c0_i32_1 = arith.constant 0 : i32
    return %arg0, %c0_i32, %c0_i32_0 : i32, i32, i32
  }
  func.func @transform_2(%arg0: i32) -> (i32, i32, i32) {
    %c0_i32 = arith.constant 0 : i32
    %c0_i32_0 = arith.constant 0 : i32
    %c0_i32_1 = arith.constant 0 : i32
    return %arg0, %c0_i32, %c0_i32_0 : i32, i32, i32
  }
}

module attributes {stable_mosaic.version = 11 : i64} {
  func.func @_matmul_bias_relu_kernel(%arg0: i32, %arg1: memref<128x112xf32, #tpu.memory_space<vmem>>, %arg2: memref<112x128xf32, #tpu.memory_space<vmem>>, %arg3: memref<1x128xf32, #tpu.memory_space<vmem>>, %arg4: memref<128x128xf32, #tpu.memory_space<vmem>>) attributes {dimension_semantics = [#tpu.dimension_semantics<parallel>], iteration_bounds = array<i64: 1>, scalar_prefetch = 0 : i64, scratch_operands = 0 : i64, tpu.core_type = #tpu.core_type<tc>, window_params = [{transform_indices = @transform_0, window_bounds = array<i64: 128, 112>}, {pipeline_mode = #tpu.pipeline_mode<synchronous>, transform_indices = @transform_1, window_bounds = array<i64: 112, 128>}, {pipeline_mode = #tpu.pipeline_mode<synchronous>, transform_indices = @transform_2, window_bounds = array<i64: 1, 128>}, {transform_indices = @transform_3, window_bounds = array<i64: 128, 128>}]} {
    %c0 = arith.constant 0 : index
    %c0_0 = arith.constant 0 : index
    %0 = vector.load %arg1[%c0, %c0_0] : memref<128x112xf32, #tpu.memory_space<vmem>>, vector<128x112xf32>
    %c0_1 = arith.constant 0 : index
    %c0_2 = arith.constant 0 : index
    %1 = vector.load %arg2[%c0_1, %c0_2] : memref<112x128xf32, #tpu.memory_space<vmem>>, vector<112x128xf32>
    %cst = arith.constant dense<0.000000e+00> : vector<128x128xf32>
    %2 = tpu.matmul %0, %1, %cst {dimension_numbers = #tpu.dot_dimension_numbers<[1], [0], [0], [1], [0, 0, 1, 1], [], []>} : vector<128x112xf32>, vector<112x128xf32>, vector<128x128xf32> -> vector<128x128xf32>
    %c0_3 = arith.constant 0 : index
    %c0_4 = arith.constant 0 : index
    %3 = vector.load %arg3[%c0_3, %c0_4] : memref<1x128xf32, #tpu.memory_space<vmem>>, vector<1x128xf32>
    %4 = vector.broadcast %3 : vector<1x128xf32> to vector<128x128xf32>
    %5 = arith.addf %2, %4 : vector<128x128xf32>
    %cst_5 = arith.constant 0.000000e+00 : f32
    %6 = vector.broadcast %cst_5 : f32 to vector<128x128xf32>
    %7 = arith.maximumf %5, %6 : vector<128x128xf32>
    %c0_6 = arith.constant 0 : index
    %c0_7 = arith.constant 0 : index
    %8 = vector.load %arg4[%c0_6, %c0_7] : memref<128x128xf32, #tpu.memory_space<vmem>>, vector<128x128xf32>
    tpu.vector_store %arg4[%c0_6, %c0_7], %7 {strides = array<i32>} : memref<128x128xf32, #tpu.memory_space<vmem>>, vector<128x128xf32>,
    return
  }
  func.func @transform_0(%arg0: i32) -> (i32, i32) {
    %c0_i32 = arith.constant 0 : i32
    %c0_i32_0 = arith.constant 0 : i32
    return %arg0, %c0_i32 : i32, i32
  }
  func.func @transform_1(%arg0: i32) -> (i32, i32) {
    %c0_i32 = arith.constant 0 : i32
    %c0_i32_0 = arith.constant 0 : i32
    %c0_i32_1 = arith.constant 0 : i32
    return %c0_i32, %c0_i32_0 : i32, i32
  }
  func.func @transform_2(%arg0: i32) -> (i32, i32) {
    %c0_i32 = arith.constant 0 : i32
    %c0_i32_0 = arith.constant 0 : i32
    %c0_i32_1 = arith.constant 0 : i32
    return %c0_i32, %c0_i32_0 : i32, i32
  }
  func.func @transform_3(%arg0: i32) -> (i32, i32) {
    %c0_i32 = arith.constant 0 : i32
    %c0_i32_0 = arith.constant 0 : i32
    return %arg0, %c0_i32 : i32, i32
  }
}

</mosaic_0001>

<bundles_post_ra>
// kernel: splatting_block_1.4
= control target key start
LH: loop header
LB: loop body
LE: loop exit
PB: predicated region body
PF: predicated region fallthrough
CT: control target
= control target key end

     0   :  { %vm43_vm0 = vcmask 64512   ;;  %s851_s0 = inlined_call_operand.vmem [shape: f32[2,64,8], index: 0, kind: input, shape index: {}]   ;;  %s852_s1 = inlined_call_operand.vmem [shape: f32[2,64,8], index: 1, kind: input, shape index: {}]   ;;  %s853_s2 = inlined_call_operand.vmem [shape: f32[2,64,8], index: 2, kind: output, shape index: {}]  }
   0x1   :  { %v386_v0 = vld [vmem:[%s851_s0] sm:$0xff]  ;;  %v391_v1 = vld [vmem:[%s851_s0 + $0x8] sm:$0xff]  ;;  %v396_v2 = vld [vmem:[%s851_s0 + $0x10] sm:$0xff] }
   0x2   :  { %v401_v3 = vld [vmem:[%s851_s0 + $0x18] sm:$0xff]  ;;  %v44_v4 = vsel %vm43_vm0, %v386_v0, 0.0  ;;  %v45_v5 = vsel %vm43_vm0, %v391_v1, 0.0  ;;  %v47_v6 = vsel %vm43_vm0, %v396_v2, 0.0  ;;  %v412_v7 = vld [vmem:[%s851_s0 + $0x20] sm:$0xff]  ;;  %v422_v10 = vld [vmem:[%s852_s1 + $0x8] sm:$0xff] }
   0x3   :  { %v417_v8 = vld [vmem:[%s852_s1] sm:$0xff]  ;;  %v46_v9 = vadd.f32 %v45_v5, %v44_v4  ;;  %v427_v11 = vld [vmem:[%s852_s1 + $0x10] sm:$0xff]  ;;  %v432_v12 = vld [vmem:[%s852_s1 + $0x18] sm:$0xff]  ;;  %v49_v13 = vsel %vm43_vm0, %v401_v3, 0.0  ;;  %v169_v18 = vsel %vm43_vm0, %v422_v10, 0.0  ;;  %v51_v21 = vsel %vm43_vm0, %v412_v7, 0.0 }
   0x4   :  { %v168_v14 = vsel %vm43_vm0, %v417_v8, 0.0  ;;  %v441_v15 = vld [vmem:[%s851_s0 + $0x28] sm:$0xff]  ;;  %v446_v16 = vld [vmem:[%s851_s0 + $0x30] sm:$0xff]  ;;  %v171_v19 = vsel %vm43_vm0, %v427_v11, 0.0  ;;  %v455_v20 = vld [vmem:[%s852_s1 + $0x20] sm:$0xff]  ;;  %v173_v27 = vsel %vm43_vm0, %v432_v12, 0.0 }
   0x5   :  { %v48_v17 = vadd.f32 %v47_v6, %v46_v9  ;;  %v170_v22 = vadd.f32 %v169_v18, %v168_v14  ;;  %v462_v23 = vld [vmem:[%s851_s0 + $0x40] sm:$0xff]  ;;  %v467_v24 = vld [vmem:[%s851_s0 + $0x48] sm:$0xff]  ;;  %v479_v28 = vld [vmem:[%s851_s0 + $0x50] sm:$0xff]  ;;  %v53_v33 = vsel %vm43_vm0, %v441_v15, 0.0  ;;  %v55_v39 = vsel %vm43_vm0, %v446_v16, 0.0 }
   0x6   :  { %v472_v25 = vld [vmem:[%s852_s1 + $0x28] sm:$0xff]  ;;  %v484_v29 = vld [vmem:[%s851_s0 + $0x58] sm:$0xff]  ;;  %v65_v30 = vsel %vm43_vm0, %v462_v23, 0.0  ;;  %v66_v31 = vsel %vm43_vm0, %v467_v24, 0.0  ;;  %v500_v35 = vld [vmem:[%s851_s0 + $0x60] sm:$0xff]  ;;  %v68_v37 = vsel %vm43_vm0, %v479_v28, 0.0 }
   0x7   :  { %v50_v26 = vadd.f32 %v49_v13, %v48_v17  ;;  %v493_v32 = vld [vmem:[%s851_s0 + $0x38] sm:$0xff]  ;;  %v172_v34 = vadd.f32 %v171_v19, %v170_v22  ;;  %v67_v36 = vadd.f32 %v66_v31, %v65_v30  ;;  %v175_v40 = vsel %vm43_vm0, %v455_v20, 0.0  ;;  %v511_v41 = vld [vmem:[%s852_s1 + $0x40] sm:$0xff]  ;;  %v516_v42 = vld [vmem:[%s852_s1 + $0x48] sm:$0xff] }
   0x8   :  { %v521_v43 = vld [vmem:[%s852_s1 + $0x50] sm:$0xff]  ;;  %v70_v44 = vsel %vm43_vm0, %v484_v29, 0.0  ;;  %v177_v47 = vsel %vm43_vm0, %v472_v25, 0.0  ;;  %v535_v48 = vld [vmem:[%s851_s0 + $0x68] sm:$0xff]  ;;  %v540_v49 = vld [vmem:[%s852_s1 + $0x58] sm:$0xff]  ;;  %v189_v51 = vsel %vm43_vm0, %v511_v41, 0.0 }
   0x9   :  { %v52_v38 = vadd.f32 %v51_v21, %v50_v26  ;;  %v528_v45 = vld [vmem:[%s852_s1 + $0x30] sm:$0xff]  ;;  %v174_v46 = vadd.f32 %v173_v27, %v172_v34  ;;  %v69_v50 = vadd.f32 %v68_v37, %v67_v36  ;;  %v72_v53 = vsel %vm43_vm0, %v500_v35, 0.0  ;;  %v553_v56 = vld [vmem:[%s852_s1 + $0x38] sm:$0xff]  ;;  %v565_v60 = vld [vmem:[%s852_s1 + $0x60] sm:$0xff] }
   0xa   :  { %v190_v54 = vsel %vm43_vm0, %v516_v42, 0.0  ;;  %v192_v55 = vsel %vm43_vm0, %v521_v43, 0.0  ;;  %v57_v57 = vsel %vm43_vm0, %v493_v32, 0.0  ;;  %v560_v59 = vld [vmem:[%s851_s0 + $0x70] sm:$0xff]  ;;  %v179_v4 = vsel %vm43_vm0, %v528_v45, 0.0  ;;  %v576_v13 = vld [vmem:[%s851_s0 + $0x78] sm:$0xff] }
   0xb   :  { %v54_v52 = vadd.f32 %v53_v33, %v52_v38  ;;  %v176_v58 = vadd.f32 %v175_v40, %v174_v46  ;;  %v71_v61 = vadd.f32 %v70_v44, %v69_v50  ;;  %v191_v62 = vadd.f32 %v190_v54, %v189_v51  ;;  %v581_v14 = vld [vmem:[%s852_s1 + $0x68] sm:$0xff]  ;;  %v592_v30 = vld [vmem:[%s852_s1 + $0x70] sm:$0xff]  ;;  %v603_v50 = vld [vmem:[%s852_s1 + $0x78] sm:$0xff] }
   0xc   :  { %v74_v5 = vsel %vm43_vm0, %v535_v48, 0.0  ;;  %v194_v6 = vsel %vm43_vm0, %v540_v49, 0.0  ;;  %v181_v21 = vsel %vm43_vm0, %v553_v56, 0.0  ;;  %v76_v22 = vsel %vm43_vm0, %v560_v59, 0.0 }
   0xd   :  { %v56_v63 = vadd.f32 %v55_v39, %v54_v52  ;;  %v178_v9 = vadd.f32 %v177_v47, %v176_v58  ;;  %v73_v17 = vadd.f32 %v72_v53, %v71_v61  ;;  %v193_v18 = vadd.f32 %v192_v55, %v191_v62 }
   0xe   :  { %v196_v26 = vsel %vm43_vm0, %v565_v60, 0.0  ;;  %v78_v36 = vsel %vm43_vm0, %v576_v13, 0.0  ;;  %v198_v37 = vsel %vm43_vm0, %v581_v14, 0.0  ;;  %v200_v46 = vsel %vm43_vm0, %v592_v30, 0.0 }
   0xf   :  { %v58_v19 = vadd.f32 %v57_v57, %v56_v63  ;;  %v180_v27 = vadd.f32 %v179_v4, %v178_v9  ;;  %v75_v31 = vadd.f32 %v74_v5, %v73_v17  ;;  %v195_v33 = vadd.f32 %v194_v6, %v193_v18 }
  0x10   :  { %v202_v61 = vsel %vm43_vm0, %v603_v50, 0.0 }
  0x11   :  { %v59_v34 = vrot.slane %v58_v19, 4  ;;  %v182_v38 = vadd.f32 %v181_v21, %v180_v27  ;;  %v77_v39 = vadd.f32 %v76_v22, %v75_v31  ;;  %v197_v40 = vadd.f32 %v196_v26, %v195_v33 }
  0x13   :  { %v60_v44 = vadd.f32 %v59_v34, %v58_v19  ;;  %v183_v47 = vrot.slane %v182_v38, 4  ;;  %v79_v51 = vadd.f32 %v78_v36, %v77_v39  ;;  %v199_v52 = vadd.f32 %v198_v37, %v197_v40 }
  0x15   :  { %v61_v53 = vrot.slane %v60_v44, 2  ;;  %v184_v54 = vadd.f32 %v183_v47, %v182_v38  ;;  %v80_v55 = vrot.slane %v79_v51, 4  ;;  %v201_v57 = vadd.f32 %v200_v46, %v199_v52 }
  0x17   :  { %v62_v58 = vadd.f32 %v61_v53, %v60_v44  ;;  %v185_v62 = vrot.slane %v184_v54, 2  ;;  %v81_v63 = vadd.f32 %v80_v55, %v79_v51  ;;  %v203_v9 = vadd.f32 %v202_v61, %v201_v57 }
  0x19   :  { %v63_v4 = vrot.slane %v62_v58, 1  ;;  %v186_v5 = vadd.f32 %v185_v62, %v184_v54  ;;  %v82_v6 = vrot.slane %v81_v63, 2  ;;  %v204_v22 = vrot.slane %v203_v9, 4 }
  0x1b   :  { %v64_v17 = vadd.f32 %v63_v4, %v62_v58  ;;  %v187_v18 = vrot.slane %v186_v5, 1  ;;  %v83_v21 = vadd.f32 %v82_v6, %v81_v63 }
  0x1d   :  { %v87_v19 = vmul.f32 0.015625, %v64_v17  ;;  %v84_v53 = vrot.slane %v83_v21, 1 }
  0x1f   :  { %v608_v26 = vsub.f32 %v386_v0, %v87_v19  ;;  %v611_v27 = vsub.f32 %v391_v1, %v87_v19  ;;  %v614_v31 = vsub.f32 %v396_v2, %v87_v19  ;;  %v617_v33 = vsub.f32 %v401_v3, %v87_v19 }
  0x20   :  { %v620_v34 = vsub.f32 %v412_v7, %v87_v19  ;;  %v623_v36 = vsub.f32 %v441_v15, %v87_v19  ;;  %v626_v37 = vsub.f32 %v446_v16, %v87_v19  ;;  %v188_v0 = vadd.f32 %v187_v18, %v186_v5 }
  0x21   :  { %v105_v1 = vmul.f32 %v608_v26, %v608_v26  ;;  %v106_v2 = vmul.f32 %v611_v27, %v611_v27  ;;  %v107_v3 = vmul.f32 %v614_v31, %v614_v31  ;;  %v108_v7 = vmul.f32 %v617_v33, %v617_v33 }
  0x22   :  { %v637_v38 = vsub.f32 %v493_v32, %v87_v19  ;;  %v109_v15 = vmul.f32 %v620_v34, %v620_v34  ;;  %v205_v16 = vadd.f32 %v204_v22, %v203_v9  ;;  %v110_v46 = vmul.f32 %v623_v36, %v623_v36 }
  0x23   :  { %v121_v39 = vsel %vm43_vm0, %v105_v1, 0.0  ;;  %v122_v40 = vsel %vm43_vm0, %v106_v2, 0.0  ;;  %v124_v44 = vsel %vm43_vm0, %v107_v3, 0.0  ;;  %v111_v47 = vmul.f32 %v626_v37, %v626_v37 }
  0x24   :  { %v123_v51 = vadd.f32 %v122_v40, %v121_v39  ;;  %v126_v32 = vsel %vm43_vm0, %v108_v7, 0.0  ;;  %v649_v52 = vmul.f32 0.015625, %v188_v0  ;;  %v112_v54 = vmul.f32 %v637_v38, %v637_v38 }
  0x25   :  { %v128_v57 = vsel %vm43_vm0, %v109_v15, 0.0  ;;  %v206_v58 = vrot.slane %v205_v16, 2  ;;  %v130_v6 = vsel %vm43_vm0, %v110_v46, 0.0  ;;  %v132_v9 = vsel %vm43_vm0, %v111_v47, 0.0 }
  0x26   :  { %v125_v55 = vadd.f32 %v124_v44, %v123_v51  ;;  %v212_v61 = vsub.f32 %v417_v8, %v649_v52  ;;  %v213_v62 = vsub.f32 %v422_v10, %v649_v52  ;;  %v214_v63 = vsub.f32 %v427_v11, %v649_v52 }
  0x27   :  { %v215_v4 = vsub.f32 %v432_v12, %v649_v52  ;;  %v216_v17 = vsub.f32 %v455_v20, %v649_v52  ;;  %v217_v8 = vsub.f32 %v472_v25, %v649_v52  ;;  %v218_v11 = vsub.f32 %v528_v45, %v649_v52 }
  0x28   :  { %v127_v5 = vadd.f32 %v126_v32, %v125_v55  ;;  %v228_v18 = vmul.f32 %v212_v61, %v212_v61  ;;  %v229_v19 = vmul.f32 %v213_v62, %v213_v62  ;;  %v230_v10 = vmul.f32 %v214_v63, %v214_v63 }
  0x29   :  { %v231_v0 = vmul.f32 %v215_v4, %v215_v4  ;;  %v85_v12 = vadd.f32 %v84_v53, %v83_v21  ;;  %v219_v1 = vsub.f32 %v553_v56, %v649_v52  ;;  %v232_v2 = vmul.f32 %v216_v17, %v216_v17 }
  0x2a   :  { %v129_v22 = vadd.f32 %v128_v57, %v127_v5  ;;  %v244_v3 = vsel %vm43_vm0, %v228_v18, 0.0  ;;  %v245_v20 = vsel %vm43_vm0, %v229_v19, 0.0  ;;  %v247_v25 = vsel %vm43_vm0, %v230_v10, 0.0 }
  0x2b   :  { %v246_v15 = vadd.f32 %v245_v20, %v244_v3  ;;  %v134_v39 = vsel %vm43_vm0, %v112_v54, 0.0  ;;  %v233_v40 = vmul.f32 %v217_v8, %v217_v8  ;;  %v249_v44 = vsel %vm43_vm0, %v231_v0, 0.0 }
  0x2c   :  { %v131_v7 = vadd.f32 %v130_v6, %v129_v22  ;;  %v234_v46 = vmul.f32 %v218_v11, %v218_v11  ;;  %v88_v47 = vmul.f32 0.015625, %v85_v12  ;;  %v235_v51 = vmul.f32 %v219_v1, %v219_v1 }
  0x2d   :  { %v248_v21 = vadd.f32 %v247_v25, %v246_v15  ;;  %v251_v56 = vsel %vm43_vm0, %v232_v2, 0.0  ;;  %v207_v32 = vadd.f32 %v206_v58, %v205_v16  ;;  %v253_v54 = vsel %vm43_vm0, %v233_v40, 0.0 }
  0x2e   :  { %v133_v45 = vadd.f32 %v132_v9, %v131_v7  ;;  %v679_v57 = vsub.f32 %v462_v23, %v88_v47  ;;  %v682_v61 = vsub.f32 %v467_v24, %v88_v47  ;;  %v686_v62 = vsub.f32 %v479_v28, %v88_v47 }
  0x2f   :  { %v250_v55 = vadd.f32 %v249_v44, %v248_v21  ;;  %v689_v63 = vsub.f32 %v484_v29, %v88_v47  ;;  %v692_v4 = vsub.f32 %v500_v35, %v88_v47  ;;  %v255_v5 = vsel %vm43_vm0, %v234_v46, 0.0 }
  0x30   :  { %v135_v53 = vadd.f32 %v134_v39, %v133_v45  ;;  %v696_v23 = vsub.f32 %v535_v48, %v88_v47  ;;  %v113_v24 = vmul.f32 %v679_v57, %v679_v57  ;;  %v114_v28 = vmul.f32 %v682_v61, %v682_v61 }
  0x31   :  { %v252_v58 = vadd.f32 %v251_v56, %v250_v55  ;;  %v115_v29 = vmul.f32 %v686_v62, %v686_v62  ;;  %v116_v35 = vmul.f32 %v689_v63, %v689_v63  ;;  %v257_v17 = vsel %vm43_vm0, %v235_v51, 0.0 }
  0x32   :  { %v136_v16 = vrot.slane %v135_v53, 4  ;;  %v708_v8 = vsub.f32 %v560_v59, %v88_v47  ;;  %v117_v48 = vmul.f32 %v692_v4, %v692_v4  ;;  %v142_v18 = vsel %vm43_vm0, %v113_v24, 0.0 }
  0x33   :  { %v254_v9 = vadd.f32 %v253_v54, %v252_v58  ;;  %v143_v19 = vsel %vm43_vm0, %v114_v28, 0.0  ;;  %v208_v10 = vrot.slane %v207_v32, 1  ;;  %v145_v12 = vsel %vm43_vm0, %v115_v29, 0.0 }
  0x34   :  { %v137_v6 = vadd.f32 %v136_v16, %v135_v53  ;;  %v144_v0 = vadd.f32 %v143_v19, %v142_v18  ;;  %v716_v1 = vsub.f32 %v576_v13, %v88_v47  ;;  %v118_v59 = vmul.f32 %v696_v23, %v696_v23 }
  0x35   :  { %v256_v11 = vadd.f32 %v255_v5, %v254_v9  ;;  %v147_v2 = vsel %vm43_vm0, %v116_v35, 0.0  ;;  %v119_v7 = vmul.f32 %v708_v8, %v708_v8  ;;  %v149_v25 = vsel %vm43_vm0, %v117_v48, 0.0 }
  0x36   :  { %v138_v22 = vrot.slane %v137_v6, 2  ;;  %v146_v15 = vadd.f32 %v145_v12, %v144_v0  ;;  %v209_v39 = vadd.f32 %v208_v10, %v207_v32  ;;  %v120_v13 = vmul.f32 %v716_v1, %v716_v1 }
  0x37   :  { %v258_v20 = vadd.f32 %v257_v17, %v256_v11  ;;  %v151_v46 = vsel %vm43_vm0, %v118_v59, 0.0  ;;  %v153_v56 = vsel %vm43_vm0, %v119_v7, 0.0 }
  0x38   :  { %v139_v3 = vadd.f32 %v138_v22, %v137_v6  ;;  %v148_v44 = vadd.f32 %v147_v2, %v146_v15  ;;  %v727_v21 = vmul.f32 0.015625, %v209_v39  ;;  %v155_v24 = vsel %vm43_vm0, %v120_v13, 0.0 }
  0x39   :  { %v259_v40 = vrot.slane %v258_v20, 4 }
  0x3a   :  { %v140_v45 = vrot.slane %v139_v3, 1  ;;  %v150_v51 = vadd.f32 %v149_v25, %v148_v44  ;;  %v220_v53 = vsub.f32 %v511_v41, %v727_v21  ;;  %v221_v32 = vsub.f32 %v516_v42, %v727_v21 }
  0x3b   :  { %v260_v47 = vadd.f32 %v259_v40, %v258_v20  ;;  %v222_v55 = vsub.f32 %v521_v43, %v727_v21  ;;  %v223_v54 = vsub.f32 %v540_v49, %v727_v21  ;;  %v224_v41 = vsub.f32 %v565_v60, %v727_v21 }
  0x3c   :  { %v152_v58 = vadd.f32 %v151_v46, %v150_v51  ;;  %v141_v5 = vadd.f32 %v140_v45, %v139_v3  ;;  %v236_v28 = vmul.f32 %v220_v53, %v220_v53  ;;  %v237_v6 = vmul.f32 %v221_v32, %v221_v32 }
  0x3d   :  { %v261_v16 = vrot.slane %v260_v47, 2  ;;  %v238_v9 = vmul.f32 %v222_v55, %v222_v55  ;;  %v239_v42 = vmul.f32 %v223_v54, %v223_v54  ;;  %v225_v43 = vsub.f32 %v581_v14, %v727_v21 }
  0x3e   :  { %v154_v35 = vadd.f32 %v153_v56, %v152_v58  ;;  %v164_v49 = vmul.f32 0.015873017, %v141_v5  ;;  %v265_v18 = vsel %vm43_vm0, %v236_v28, 0.0  ;;  %v266_v19 = vsel %vm43_vm0, %v237_v6, 0.0 }
  0x3f   :  { %v262_v29 = vadd.f32 %v261_v16, %v260_v47  ;;  %v268_v10 = vsel %vm43_vm0, %v238_v9, 0.0  ;;  %v226_v11 = vsub.f32 %v592_v30, %v727_v21  ;;  %v240_v60 = vmul.f32 %v224_v41, %v224_v41 }
  0x40   :  { %v156_v48 = vadd.f32 %v155_v24, %v154_v35  ;;  %v267_v0 = vadd.f32 %v266_v19, %v265_v18  ;;  %v270_v59 = vsel %vm43_vm0, %v239_v42, 0.0  ;;  %v227_v14 = vsub.f32 %v603_v50, %v727_v21 }
  0x41   :  { %v263_v17 = vrot.slane %v262_v29, 1  ;;  %v241_v3 = vmul.f32 %v225_v43, %v225_v43  ;;  %v166_v7 = vadd.f32 1e-05, %v164_v49  ;;  %v242_v25 = vmul.f32 %v226_v11, %v226_v11 }
  0x42   :  { %v157_v12 = vrot.slane %v156_v48, 4  ;;  %v269_v20 = vadd.f32 %v268_v10, %v267_v0  ;;  %v272_v40 = vsel %vm43_vm0, %v240_v60, 0.0  ;;  %v243_v30 = vmul.f32 %v227_v14, %v227_v14 }
  0x43   :  { %v264_v22 = vadd.f32 %v263_v17, %v262_v29  ;;  %v274_v45 = vsel %vm43_vm0, %v241_v3, 0.0  ;;  %v276_v46 = vsel %vm43_vm0, %v242_v25, 0.0 }
  0x44   :  { %v271_v39 = vadd.f32 %v270_v59, %v269_v20  ;;  %v158_v44 = vadd.f32 %v157_v12, %v156_v48  ;;  %v278_v50 = vsel %vm43_vm0, %v243_v30, 0.0 }
  0x45   :  { %v286_v2 = vmul.f32 0.015873017, %v264_v22 }
  0x46   :  { %v273_v13 = vadd.f32 %v272_v40, %v271_v39  ;;  %v159_v47 = vrot.slane %v158_v44, 2 }
  0x47   :  { %v288_v15 = vadd.f32 1e-05, %v286_v2 }
  0x48   :  { %v275_v51 = vadd.f32 %v274_v45, %v273_v13  ;;  %v160_v53 = vadd.f32 %v159_v47, %v158_v44 }
  0x49   :  { %360 = vrsqrt.f32 %v288_v15  ;;  %vm292_vm1 = vcmp.eq.f32.partialorder %v288_v15, inf  ;;  %v295_v5 = vand.u32 2147483648, %v288_v15  ;;  %vm294_vm2 = vcmp.eq.f32.partialorder %v288_v15, 0.0 }
  0x4a   :  { %362 = vrsqrt.f32 %v166_v7  ;;  %v277_v56 = vadd.f32 %v276_v46, %v275_v51  ;;  %v161_v54 = vrot.slane %v160_v53, 1 }
  0x4c   :  { %v279_v32 = vadd.f32 %v278_v50, %v277_v56  ;;  %v162_v35 = vadd.f32 %v161_v54, %v160_v53 }
  0x4e   :  { %v280_v55 = vrot.slane %v279_v32, 4  ;;  %v165_v48 = vmul.f32 0.015873017, %v162_v35 }
  0x50   :  { %v281_v16 = vadd.f32 %v280_v55, %v279_v32 }
  0x52   :  { %v282_v24 = vrot.slane %v281_v16, 2 }
  0x54   :  { %v283_v41 = vadd.f32 %v282_v24, %v281_v16 }
  0x56   :  { %v361_v58 = vpop.eup %360  ;;  %v284_v42 = vrot.slane %v283_v41, 1 }
  0x57   :  { %v291_v28 = vmul.f32 %v361_v58, %v288_v15  ;;  %v363_v29 = vpop.eup %362 }
  0x58   :  { %v285_v43 = vadd.f32 %v284_v42, %v283_v41 }
  0x59   :  { %v293_v6 = vsel %vm292_vm1, %v288_v15, %v291_v28 }
  0x5a   :  { %v296_v9 = vsel %vm294_vm2, %v295_v5, %v293_v6 }
  0x5b   :  { %v306_v17 = vmul.f32 %v363_v29, %v296_v9 }
  0x5d   :  { %v308_v49 = vmul.f32 %v306_v17, %v608_v26  ;;  %v309_v18 = vmul.f32 %v306_v17, %v611_v27  ;;  %v310_v19 = vmul.f32 %v306_v17, %v614_v31  ;;  %v311_v10 = vmul.f32 %v306_v17, %v617_v33 }
  0x5e   :  { %v312_v22 = vmul.f32 %v306_v17, %v620_v34  ;;  %v313_v11 = vmul.f32 %v306_v17, %v623_v36  ;;  %v314_v60 = vmul.f32 %v306_v17, %v626_v37  ;;  %v315_v0 = vmul.f32 %v306_v17, %v637_v38 }
  0x5f   :  { %v324_v12 = vadd.f32 %v308_v49, %v649_v52  ;;  %v325_v59 = vadd.f32 %v309_v18, %v649_v52  ;;  %v326_v26 = vadd.f32 %v310_v19, %v649_v52  ;;  %v327_v27 = vadd.f32 %v311_v10, %v649_v52 }
  0x60   :  { %v328_v31 = vadd.f32 %v312_v22, %v649_v52  ;;  %v329_v33 = vadd.f32 %v313_v11, %v649_v52  ;;  %v330_v34 = vadd.f32 %v314_v60, %v649_v52  ;;  %v331_v36 = vadd.f32 %v315_v0, %v649_v52 }
  0x61   :  { %340 = vst.msk [vmem:[%s853_s2] sm:$0xff] %vm43_vm0, %v324_v12  ;;  %341 = vst.msk [vmem:[%s853_s2 + $0x8] sm:$0xff] %vm43_vm0, %v325_v59  ;;  %v287_v37 = vmul.f32 0.015873017, %v285_v43  ;;  %v167_v38 = vadd.f32 1e-05, %v165_v48 }
  0x62   :  { %342 = vst.msk [vmem:[%s853_s2 + $0x10] sm:$0xff] %vm43_vm0, %v326_v26  ;;  %343 = vst.msk [vmem:[%s853_s2 + $0x18] sm:$0xff] %vm43_vm0, %v327_v27 }
  0x63   :  { %344 = vst.msk [vmem:[%s853_s2 + $0x20] sm:$0xff] %vm43_vm0, %v328_v31  ;;  %345 = vst.msk [vmem:[%s853_s2 + $0x28] sm:$0xff] %vm43_vm0, %v329_v33  ;;  %v289_v52 = vadd.f32 1e-05, %v287_v37 }
  0x64   :  { %346 = vst.msk [vmem:[%s853_s2 + $0x30] sm:$0xff] %vm43_vm0, %v330_v34  ;;  %347 = vst.msk [vmem:[%s853_s2 + $0x38] sm:$0xff] %vm43_vm0, %v331_v36 }
  0x65   :  { %364 = vrsqrt.f32 %v289_v52  ;;  %vm299_vm3 = vcmp.eq.f32.partialorder %v289_v52, inf  ;;  %v302_v14 = vand.u32 2147483648, %v289_v52  ;;  %vm301_vm4 = vcmp.eq.f32.partialorder %v289_v52, 0.0 }
  0x66   :  { %366 = vrsqrt.f32 %v167_v38 }
  0x72   :  { %v365_v2 = vpop.eup %364 }
  0x73   :  { %v298_v3 = vmul.f32 %v365_v2, %v289_v52  ;;  %v367_v20 = vpop.eup %366 }
  0x75   :  { %v300_v7 = vsel %vm299_vm3, %v289_v52, %v298_v3 }
  0x76   :  { %v303_v15 = vsel %vm301_vm4, %v302_v14, %v300_v7 }
  0x77   :  { %v307_v25 = vmul.f32 %v367_v20, %v303_v15 }
  0x79   :  { %v316_v39 = vmul.f32 %v307_v25, %v679_v57  ;;  %v317_v40 = vmul.f32 %v307_v25, %v682_v61  ;;  %v318_v44 = vmul.f32 %v307_v25, %v686_v62  ;;  %v319_v30 = vmul.f32 %v307_v25, %v689_v63 }
  0x7a   :  { %v320_v45 = vmul.f32 %v307_v25, %v692_v4  ;;  %v321_v13 = vmul.f32 %v307_v25, %v696_v23  ;;  %v322_v46 = vmul.f32 %v307_v25, %v708_v8  ;;  %v323_v47 = vmul.f32 %v307_v25, %v716_v1 }
  0x7b   :  { %v332_v51 = vadd.f32 %v316_v39, %v727_v21  ;;  %v333_v50 = vadd.f32 %v317_v40, %v727_v21  ;;  %v334_v57 = vadd.f32 %v318_v44, %v727_v21  ;;  %v335_v61 = vadd.f32 %v319_v30, %v727_v21 }
  0x7c   :  { %v336_v62 = vadd.f32 %v320_v45, %v727_v21  ;;  %v337_v63 = vadd.f32 %v321_v13, %v727_v21  ;;  %v338_v4 = vadd.f32 %v322_v46, %v727_v21  ;;  %v339_v23 = vadd.f32 %v323_v47, %v727_v21 }
  0x7d   :  { %348 = vst.msk [vmem:[%s853_s2 + $0x40] sm:$0xff] %vm43_vm0, %v332_v51  ;;  %349 = vst.msk [vmem:[%s853_s2 + $0x48] sm:$0xff] %vm43_vm0, %v333_v50 }
  0x7e   :  { %350 = vst.msk [vmem:[%s853_s2 + $0x50] sm:$0xff] %vm43_vm0, %v334_v57  ;;  %351 = vst.msk [vmem:[%s853_s2 + $0x58] sm:$0xff] %vm43_vm0, %v335_v61 }
  0x7f   :  { %352 = vst.msk [vmem:[%s853_s2 + $0x60] sm:$0xff] %vm43_vm0, %v336_v62  ;;  %353 = vst.msk [vmem:[%s853_s2 + $0x68] sm:$0xff] %vm43_vm0, %v337_v63 }
  0x80   :  { %354 = vst.msk [vmem:[%s853_s2 + $0x70] sm:$0xff] %vm43_vm0, %v338_v4  ;;  %355 = vst.msk [vmem:[%s853_s2 + $0x78] sm:$0xff] %vm43_vm0, %v339_v23 }

// kernel: splatting_block_1.3
= control target key start
LH: loop header
LB: loop body
LE: loop exit
PB: predicated region body
PF: predicated region fallthrough
CT: control target
= control target key end

     0   :  { %vm58_vm0 = vcmask 326656   ;;  %s882_s1 = inlined_call_operand.vmem [shape: f32[40,128], index: 1, kind: input, shape index: {}]   ;;  %s883_s0 = inlined_call_operand.vmem [shape: f32[256,40], index: 0, kind: input, shape index: {}]   ;;  %s884_s2 = inlined_call_operand.vmem [shape: f32[1,128], index: 2, kind: input, shape index: {}]   ;;  %s885_s3 = inlined_call_operand.vmem [shape: f32[256,128], index: 3, kind: output, shape index: {}]  }
   0x1   :  { %v50_v0 = vld [vmem:[%s882_s1 + $0x20] sm:$0xff]  ;;  %v49_v1 = vld [vmem:[%s882_s1 + $0x18] sm:$0xff]  ;;  %v48_v2 = vld [vmem:[%s882_s1 + $0x10] sm:$0xff] }
   0x2   :  { %518 = vmatprep.subr.mxu0 %v50_v0  ;;  %576 = vmatprep.subr.mxu1 %v50_v0  ;;  %v47_v3 = vld [vmem:[%s882_s1 + $0x8] sm:$0xff]  ;;  %v46_v4 = vld [vmem:[%s882_s1] sm:$0xff]  ;;  %v16_v9 = vld [vmem:[%s883_s0 + $0x10] sm:$0xff] }
   0x3   :  { %519 = vmatpush3.msra.mxu0 %v50_v0  ;;  %581 = vmatpush3.msra.mxu1 %v50_v0  ;;  %v14_v5 = vld [vmem:[%s883_s0] sm:$0xff]  ;;  %v15_v7 = vld [vmem:[%s883_s0 + $0x8] sm:$0xff]  ;;  %v32_v10 = vld [vmem:[%s883_s0 + $0x90] sm:$0xff] }
   0x4   :  { %520 = vmatprep.subr.mxu0 %v49_v1  ;;  %577 = vmatprep.subr.mxu1 %v49_v1  ;;  %v30_v6 = vld [vmem:[%s883_s0 + $0x80] sm:$0xff]  ;;  %v31_v8 = vld [vmem:[%s883_s0 + $0x88] sm:$0xff]  ;;  %v17_v11 = vld [vmem:[%s883_s0 + $0x18] sm:$0xff] }
   0x5   :  { %521 = vmatpush3.msra.mxu0 %v49_v1  ;;  %582 = vmatpush3.msra.mxu1 %v49_v1  ;;  %v33_v12 = vld [vmem:[%s883_s0 + $0x98] sm:$0xff]  ;;  %v18_v13 = vld [vmem:[%s883_s0 + $0x20] sm:$0xff]  ;;  %v19_v15 = vld [vmem:[%s883_s0 + $0x28] sm:$0xff] }
   0x6   :  { %522 = vmatprep.subr.mxu0 %v48_v2  ;;  %578 = vmatprep.subr.mxu1 %v48_v2  ;;  %v34_v14 = vld [vmem:[%s883_s0 + $0xa0] sm:$0xff]  ;;  %v35_v16 = vld [vmem:[%s883_s0 + $0xa8] sm:$0xff]  ;;  %v20_v17 = vld [vmem:[%s883_s0 + $0x30] sm:$0xff] }
   0x7   :  { %523 = vmatpush3.msra.mxu0 %v48_v2  ;;  %583 = vmatpush3.msra.mxu1 %v48_v2  ;;  %v36_v18 = vld [vmem:[%s883_s0 + $0xb0] sm:$0xff]  ;;  %v21_v19 = vld [vmem:[%s883_s0 + $0x38] sm:$0xff]  ;;  %v22_v21 = vld [vmem:[%s883_s0 + $0x40] sm:$0xff] }
   0x8   :  { %524 = vmatprep.subr.mxu0 %v47_v3  ;;  %579 = vmatprep.subr.mxu1 %v47_v3  ;;  %v37_v20 = vld [vmem:[%s883_s0 + $0xb8] sm:$0xff]  ;;  %v38_v22 = vld [vmem:[%s883_s0 + $0xc0] sm:$0xff]  ;;  %v23_v23 = vld [vmem:[%s883_s0 + $0x48] sm:$0xff] }
   0x9   :  { %525 = vmatpush3.msra.mxu0 %v47_v3  ;;  %584 = vmatpush3.msra.mxu1 %v47_v3  ;;  %v39_v24 = vld [vmem:[%s883_s0 + $0xc8] sm:$0xff]  ;;  %v24_v25 = vld [vmem:[%s883_s0 + $0x50] sm:$0xff]  ;;  %v25_v27 = vld [vmem:[%s883_s0 + $0x58] sm:$0xff] }
   0xa   :  { %526 = vmatprep.subr.mxu0 %v46_v4  ;;  %580 = vmatprep.subr.mxu1 %v46_v4  ;;  %v40_v26 = vld [vmem:[%s883_s0 + $0xd0] sm:$0xff]  ;;  %v41_v28 = vld [vmem:[%s883_s0 + $0xd8] sm:$0xff]  ;;  %v26_v29 = vld [vmem:[%s883_s0 + $0x60] sm:$0xff] }
   0xb   :  { %527 = vmatpush3.msra.mxu0 %v46_v4  ;;  %585 = vmatpush3.msra.mxu1 %v46_v4  ;;  %v42_v30 = vld [vmem:[%s883_s0 + $0xe0] sm:$0xff]  ;;  %v27_v31 = vld [vmem:[%s883_s0 + $0x68] sm:$0xff]  ;;  %v28_v33 = vld [vmem:[%s883_s0 + $0x70] sm:$0xff] }
   0xc   :  { %528 = vmatprep.mubr.msk.f32.mxu0 %vm58_vm0, %v14_v5  ;;  %552 = vmatprep.mubr.msk.f32.mxu1 %vm58_vm0, %v30_v6  ;;  %v43_v32 = vld [vmem:[%s883_s0 + $0xe8] sm:$0xff]  ;;  %v44_v34 = vld [vmem:[%s883_s0 + $0xf0] sm:$0xff]  ;;  %v29_v35 = vld [vmem:[%s883_s0 + $0x78] sm:$0xff] }
   0xd   :  { %529 = vmatmul.mubr.msk.f32.vlgmr.msra.gmra.mxu0 %vm58_vm0, %v15_v7  ;;  %553 = vmatmul.mubr.msk.f32.vlgmr.msra.gmra.mxu1 %vm58_vm0, %v31_v8  ;;  %v45_v36 = vld [vmem:[%s883_s0 + $0xf8] sm:$0xff]  ;;  %v752_v37 = vld [vmem:[%s884_s2] ss:$0 sm:$0xff] }
   0xe   :  { %531 = vmatprep.mubr.msk.f32.mxu0 %vm58_vm0, %v16_v9  ;;  %555 = vmatprep.mubr.msk.f32.mxu1 %vm58_vm0, %v32_v10 }
  0x11   :  { %532 = vmatmul.mubr.msk.f32.gmra.mxu0 %vm58_vm0, %v17_v11  ;;  %556 = vmatmul.mubr.msk.f32.gmra.mxu1 %vm58_vm0, %v33_v12 }
  0x12   :  { %534 = vmatprep.mubr.msk.f32.mxu0 %vm58_vm0, %v18_v13  ;;  %558 = vmatprep.mubr.msk.f32.mxu1 %vm58_vm0, %v34_v14 }
  0x15   :  { %535 = vmatmul.mubr.msk.f32.gmra.mxu0 %vm58_vm0, %v19_v15  ;;  %559 = vmatmul.mubr.msk.f32.gmra.mxu1 %vm58_vm0, %v35_v16 }
  0x16   :  { %537 = vmatprep.mubr.msk.f32.mxu0 %vm58_vm0, %v20_v17  ;;  %561 = vmatprep.mubr.msk.f32.mxu1 %vm58_vm0, %v36_v18 }
  0x19   :  { %538 = vmatmul.mubr.msk.f32.gmra.mxu0 %vm58_vm0, %v21_v19  ;;  %562 = vmatmul.mubr.msk.f32.gmra.mxu1 %vm58_vm0, %v37_v20 }
  0x1a   :  { %540 = vmatprep.mubr.msk.f32.mxu0 %vm58_vm0, %v22_v21  ;;  %564 = vmatprep.mubr.msk.f32.mxu1 %vm58_vm0, %v38_v22 }
  0x1d   :  { %541 = vmatmul.mubr.msk.f32.gmra.mxu0 %vm58_vm0, %v23_v23  ;;  %565 = vmatmul.mubr.msk.f32.gmra.mxu1 %vm58_vm0, %v39_v24 }
  0x1e   :  { %543 = vmatprep.mubr.msk.f32.mxu0 %vm58_vm0, %v24_v25  ;;  %567 = vmatprep.mubr.msk.f32.mxu1 %vm58_vm0, %v40_v26 }
  0x21   :  { %544 = vmatmul.mubr.msk.f32.gmra.mxu0 %vm58_vm0, %v25_v27  ;;  %568 = vmatmul.mubr.msk.f32.gmra.mxu1 %vm58_vm0, %v41_v28 }
  0x22   :  { %546 = vmatprep.mubr.msk.f32.mxu0 %vm58_vm0, %v26_v29  ;;  %570 = vmatprep.mubr.msk.f32.mxu1 %vm58_vm0, %v42_v30 }
  0x25   :  { %547 = vmatmul.mubr.msk.f32.gmra.mxu0 %vm58_vm0, %v27_v31  ;;  %571 = vmatmul.mubr.msk.f32.gmra.mxu1 %vm58_vm0, %v43_v32 }
  0x26   :  { %549 = vmatprep.mubr.msk.f32.mxu0 %vm58_vm0, %v28_v33  ;;  %573 = vmatprep.mubr.msk.f32.mxu1 %vm58_vm0, %v44_v34 }
  0x29   :  { %550 = vmatmul.mubr.msk.f32.gmra.mxu0 %vm58_vm0, %v29_v35  ;;  %574 = vmatmul.mubr.msk.f32.gmra.mxu1 %vm58_vm0, %v45_v36 }
  0xcd   :  { %v530_v38 = vpop.f32.mrf.mxu0  ;;  %v554_v39 = vpop.f32.mrf.mxu1 }
  0xce   :  { %v227_v40 = vadd.f32 %v530_v38, %v752_v37  ;;  %v307_v41 = vadd.f32 %v554_v39, %v752_v37 }
  0xcf   :  { %v221_v42 = vpop.f32.mrf.mxu0  ;;  %v301_v43 = vpop.f32.mrf.mxu1 }
  0xd0   :  { %v381_v44 = vmax.f32 %v227_v40, 0.0  ;;  %v397_v45 = vmax.f32 %v307_v41, 0.0  ;;  %v222_v46 = vadd.f32 %v752_v37, %v221_v42  ;;  %v302_v47 = vadd.f32 %v752_v37, %v301_v43 }
  0xd1   :  { %v533_v48 = vpop.f32.mrf.mxu0  ;;  %v557_v49 = vpop.f32.mrf.mxu1 }
  0xd2   :  { %413 = vst [vmem:[%s885_s3 + $0x8] sm:$0xff] %v381_v44  ;;  %429 = vst [vmem:[%s885_s3 + $0x88] sm:$0xff] %v397_v45  ;;  %v380_v50 = vmax.f32 %v222_v46, 0.0  ;;  %v396_v51 = vmax.f32 %v302_v47, 0.0  ;;  %v237_v52 = vadd.f32 %v533_v48, %v752_v37  ;;  %v317_v53 = vadd.f32 %v557_v49, %v752_v37 }
  0xd3   :  { %v231_v54 = vpop.f32.mrf.mxu0  ;;  %v311_v55 = vpop.f32.mrf.mxu1 }
  0xd4   :  { %412 = vst [vmem:[%s885_s3] sm:$0xff] %v380_v50  ;;  %428 = vst [vmem:[%s885_s3 + $0x80] sm:$0xff] %v396_v51  ;;  %v383_v56 = vmax.f32 %v237_v52, 0.0  ;;  %v399_v57 = vmax.f32 %v317_v53, 0.0  ;;  %v232_v58 = vadd.f32 %v752_v37, %v231_v54  ;;  %v312_v59 = vadd.f32 %v752_v37, %v311_v55 }
  0xd5   :  { %v536_v60 = vpop.f32.mrf.mxu0  ;;  %v560_v61 = vpop.f32.mrf.mxu1 }
  0xd6   :  { %415 = vst [vmem:[%s885_s3 + $0x18] sm:$0xff] %v383_v56  ;;  %431 = vst [vmem:[%s885_s3 + $0x98] sm:$0xff] %v399_v57  ;;  %v382_v62 = vmax.f32 %v232_v58, 0.0  ;;  %v398_v63 = vmax.f32 %v312_v59, 0.0  ;;  %v247_v0 = vadd.f32 %v536_v60, %v752_v37  ;;  %v327_v1 = vadd.f32 %v560_v61, %v752_v37 }
  0xd7   :  { %v241_v2 = vpop.f32.mrf.mxu0  ;;  %v321_v3 = vpop.f32.mrf.mxu1 }
  0xd8   :  { %414 = vst [vmem:[%s885_s3 + $0x10] sm:$0xff] %v382_v62  ;;  %430 = vst [vmem:[%s885_s3 + $0x90] sm:$0xff] %v398_v63  ;;  %v385_v4 = vmax.f32 %v247_v0, 0.0  ;;  %v401_v5 = vmax.f32 %v327_v1, 0.0  ;;  %v242_v6 = vadd.f32 %v752_v37, %v241_v2  ;;  %v322_v7 = vadd.f32 %v752_v37, %v321_v3 }
  0xd9   :  { %v539_v8 = vpop.f32.mrf.mxu0  ;;  %v563_v9 = vpop.f32.mrf.mxu1 }
  0xda   :  { %417 = vst [vmem:[%s885_s3 + $0x28] sm:$0xff] %v385_v4  ;;  %433 = vst [vmem:[%s885_s3 + $0xa8] sm:$0xff] %v401_v5  ;;  %v384_v10 = vmax.f32 %v242_v6, 0.0  ;;  %v400_v11 = vmax.f32 %v322_v7, 0.0  ;;  %v257_v12 = vadd.f32 %v539_v8, %v752_v37  ;;  %v337_v13 = vadd.f32 %v563_v9, %v752_v37 }
  0xdb   :  { %v251_v14 = vpop.f32.mrf.mxu0  ;;  %v331_v15 = vpop.f32.mrf.mxu1 }
  0xdc   :  { %416 = vst [vmem:[%s885_s3 + $0x20] sm:$0xff] %v384_v10  ;;  %432 = vst [vmem:[%s885_s3 + $0xa0] sm:$0xff] %v400_v11  ;;  %v387_v16 = vmax.f32 %v257_v12, 0.0  ;;  %v403_v17 = vmax.f32 %v337_v13, 0.0  ;;  %v252_v18 = vadd.f32 %v752_v37, %v251_v14  ;;  %v332_v19 = vadd.f32 %v752_v37, %v331_v15 }
  0xdd   :  { %v542_v20 = vpop.f32.mrf.mxu0  ;;  %v566_v21 = vpop.f32.mrf.mxu1 }
  0xde   :  { %419 = vst [vmem:[%s885_s3 + $0x38] sm:$0xff] %v387_v16  ;;  %435 = vst [vmem:[%s885_s3 + $0xb8] sm:$0xff] %v403_v17  ;;  %v386_v22 = vmax.f32 %v252_v18, 0.0  ;;  %v402_v23 = vmax.f32 %v332_v19, 0.0  ;;  %v267_v24 = vadd.f32 %v542_v20, %v752_v37  ;;  %v347_v25 = vadd.f32 %v566_v21, %v752_v37 }
  0xdf   :  { %v261_v26 = vpop.f32.mrf.mxu0  ;;  %v341_v27 = vpop.f32.mrf.mxu1 }
  0xe0   :  { %418 = vst [vmem:[%s885_s3 + $0x30] sm:$0xff] %v386_v22  ;;  %434 = vst [vmem:[%s885_s3 + $0xb0] sm:$0xff] %v402_v23  ;;  %v389_v28 = vmax.f32 %v267_v24, 0.0  ;;  %v405_v29 = vmax.f32 %v347_v25, 0.0  ;;  %v262_v30 = vadd.f32 %v752_v37, %v261_v26  ;;  %v342_v31 = vadd.f32 %v752_v37, %v341_v27 }
  0xe1   :  { %v545_v32 = vpop.f32.mrf.mxu0  ;;  %v569_v33 = vpop.f32.mrf.mxu1 }
  0xe2   :  { %421 = vst [vmem:[%s885_s3 + $0x48] sm:$0xff] %v389_v28  ;;  %437 = vst [vmem:[%s885_s3 + $0xc8] sm:$0xff] %v405_v29  ;;  %v388_v34 = vmax.f32 %v262_v30, 0.0  ;;  %v404_v35 = vmax.f32 %v342_v31, 0.0  ;;  %v277_v36 = vadd.f32 %v545_v32, %v752_v37  ;;  %v357_v38 = vadd.f32 %v569_v33, %v752_v37 }
  0xe3   :  { %v271_v39 = vpop.f32.mrf.mxu0  ;;  %v351_v40 = vpop.f32.mrf.mxu1 }
  0xe4   :  { %420 = vst [vmem:[%s885_s3 + $0x40] sm:$0xff] %v388_v34  ;;  %436 = vst [vmem:[%s885_s3 + $0xc0] sm:$0xff] %v404_v35  ;;  %v391_v41 = vmax.f32 %v277_v36, 0.0  ;;  %v407_v42 = vmax.f32 %v357_v38, 0.0  ;;  %v272_v43 = vadd.f32 %v752_v37, %v271_v39  ;;  %v352_v44 = vadd.f32 %v752_v37, %v351_v40 }
  0xe5   :  { %v548_v45 = vpop.f32.mrf.mxu0  ;;  %v572_v46 = vpop.f32.mrf.mxu1 }
  0xe6   :  { %423 = vst [vmem:[%s885_s3 + $0x58] sm:$0xff] %v391_v41  ;;  %439 = vst [vmem:[%s885_s3 + $0xd8] sm:$0xff] %v407_v42  ;;  %v390_v47 = vmax.f32 %v272_v43, 0.0  ;;  %v406_v48 = vmax.f32 %v352_v44, 0.0  ;;  %v287_v49 = vadd.f32 %v548_v45, %v752_v37  ;;  %v367_v50 = vadd.f32 %v572_v46, %v752_v37 }
  0xe7   :  { %v281_v51 = vpop.f32.mrf.mxu0  ;;  %v361_v52 = vpop.f32.mrf.mxu1 }
  0xe8   :  { %422 = vst [vmem:[%s885_s3 + $0x50] sm:$0xff] %v390_v47  ;;  %438 = vst [vmem:[%s885_s3 + $0xd0] sm:$0xff] %v406_v48  ;;  %v393_v53 = vmax.f32 %v287_v49, 0.0  ;;  %v409_v54 = vmax.f32 %v367_v50, 0.0  ;;  %v282_v55 = vadd.f32 %v752_v37, %v281_v51  ;;  %v362_v56 = vadd.f32 %v752_v37, %v361_v52 }
  0xe9   :  { %v551_v57 = vpop.f32.mrf.mxu0  ;;  %v575_v58 = vpop.f32.mrf.mxu1 }
  0xea   :  { %425 = vst [vmem:[%s885_s3 + $0x68] sm:$0xff] %v393_v53  ;;  %441 = vst [vmem:[%s885_s3 + $0xe8] sm:$0xff] %v409_v54  ;;  %v392_v59 = vmax.f32 %v282_v55, 0.0  ;;  %v408_v60 = vmax.f32 %v362_v56, 0.0  ;;  %v297_v61 = vadd.f32 %v551_v57, %v752_v37  ;;  %v377_v62 = vadd.f32 %v575_v58, %v752_v37 }
  0xeb   :  { %v291_v63 = vpop.f32.mrf.mxu0  ;;  %v371_v0 = vpop.f32.mrf.mxu1 }
  0xec   :  { %424 = vst [vmem:[%s885_s3 + $0x60] sm:$0xff] %v392_v59  ;;  %440 = vst [vmem:[%s885_s3 + $0xe0] sm:$0xff] %v408_v60  ;;  %v395_v1 = vmax.f32 %v297_v61, 0.0  ;;  %v411_v2 = vmax.f32 %v377_v62, 0.0  ;;  %v292_v3 = vadd.f32 %v752_v37, %v291_v63  ;;  %v372_v4 = vadd.f32 %v752_v37, %v371_v0 }
  0xee   :  { %427 = vst [vmem:[%s885_s3 + $0x78] sm:$0xff] %v395_v1  ;;  %443 = vst [vmem:[%s885_s3 + $0xf8] sm:$0xff] %v411_v2  ;;  %v394_v5 = vmax.f32 %v292_v3, 0.0  ;;  %v410_v6 = vmax.f32 %v372_v4, 0.0 }
  0xf0   :  { %426 = vst [vmem:[%s885_s3 + $0x70] sm:$0xff] %v394_v5  ;;  %442 = vst [vmem:[%s885_s3 + $0xf0] sm:$0xff] %v410_v6 }

// kernel: splatting_block_1.5
= control target key start
LH: loop header
LB: loop body
LE: loop exit
PB: predicated region body
PF: predicated region fallthrough
CT: control target
= control target key end

     0   :  { %vm51_vm0 = vcmask 916480   ;;  %s585_s1 = inlined_call_operand.vmem [shape: f32[112,128], index: 1, kind: input, shape index: {}]   ;;  %s586_s0 = inlined_call_operand.vmem [shape: f32[128,112], index: 0, kind: input, shape index: {}]   ;;  %s587_s2 = inlined_call_operand.vmem [shape: f32[1,128], index: 2, kind: input, shape index: {}]   ;;  %s588_s3 = inlined_call_operand.vmem [shape: f32[128,128], index: 3, kind: output, shape index: {}]  }
   0x1   :  { %v43_v0 = vld [vmem:[%s585_s1 + $0x68] sm:$0xff]  ;;  %v42_v1 = vld [vmem:[%s585_s1 + $0x60] sm:$0xff]  ;;  %v41_v2 = vld [vmem:[%s585_s1 + $0x58] sm:$0xff] }
   0x2   :  { %328 = vmatprep.subr.mxu0 %v43_v0  ;;  %380 = vmatprep.subr.mxu1 %v43_v0  ;;  %v40_v3 = vld [vmem:[%s585_s1 + $0x50] sm:$0xff]  ;;  %v39_v4 = vld [vmem:[%s585_s1 + $0x48] sm:$0xff]  ;;  %v38_v5 = vld [vmem:[%s585_s1 + $0x40] sm:$0xff] }
   0x3   :  { %329 = vmatpush3.msra.mxu0 %v43_v0  ;;  %394 = vmatpush3.msra.mxu1 %v43_v0  ;;  %v37_v6 = vld [vmem:[%s585_s1 + $0x38] sm:$0xff]  ;;  %v36_v7 = vld [vmem:[%s585_s1 + $0x30] sm:$0xff]  ;;  %v35_v8 = vld [vmem:[%s585_s1 + $0x28] sm:$0xff] }
   0x4   :  { %330 = vmatprep.subr.mxu0 %v42_v1  ;;  %381 = vmatprep.subr.mxu1 %v42_v1  ;;  %v34_v9 = vld [vmem:[%s585_s1 + $0x20] sm:$0xff]  ;;  %v33_v10 = vld [vmem:[%s585_s1 + $0x18] sm:$0xff]  ;;  %v32_v11 = vld [vmem:[%s585_s1 + $0x10] sm:$0xff] }
   0x5   :  { %331 = vmatpush3.msra.mxu0 %v42_v1  ;;  %395 = vmatpush3.msra.mxu1 %v42_v1  ;;  %v31_v12 = vld [vmem:[%s585_s1 + $0x8] sm:$0xff]  ;;  %v30_v13 = vld [vmem:[%s585_s1] sm:$0xff]  ;;  %v16_v18 = vld [vmem:[%s586_s0 + $0x10] sm:$0xff] }
   0x6   :  { %332 = vmatprep.subr.mxu0 %v41_v2  ;;  %382 = vmatprep.subr.mxu1 %v41_v2  ;;  %v14_v14 = vld [vmem:[%s586_s0] sm:$0xff]  ;;  %v15_v16 = vld [vmem:[%s586_s0 + $0x8] sm:$0xff]  ;;  %v24_v19 = vld [vmem:[%s586_s0 + $0x50] sm:$0xff] }
   0x7   :  { %333 = vmatpush3.msra.mxu0 %v41_v2  ;;  %396 = vmatpush3.msra.mxu1 %v41_v2  ;;  %v22_v15 = vld [vmem:[%s586_s0 + $0x40] sm:$0xff]  ;;  %v23_v17 = vld [vmem:[%s586_s0 + $0x48] sm:$0xff]  ;;  %v17_v20 = vld [vmem:[%s586_s0 + $0x18] sm:$0xff] }
   0x8   :  { %334 = vmatprep.subr.mxu0 %v40_v3  ;;  %383 = vmatprep.subr.mxu1 %v40_v3  ;;  %v25_v21 = vld [vmem:[%s586_s0 + $0x58] sm:$0xff]  ;;  %v18_v22 = vld [vmem:[%s586_s0 + $0x20] sm:$0xff]  ;;  %v19_v24 = vld [vmem:[%s586_s0 + $0x28] sm:$0xff] }
   0x9   :  { %335 = vmatpush3.msra.mxu0 %v40_v3  ;;  %397 = vmatpush3.msra.mxu1 %v40_v3  ;;  %v26_v23 = vld [vmem:[%s586_s0 + $0x60] sm:$0xff]  ;;  %v27_v25 = vld [vmem:[%s586_s0 + $0x68] sm:$0xff]  ;;  %v20_v26 = vld [vmem:[%s586_s0 + $0x30] sm:$0xff] }
   0xa   :  { %336 = vmatprep.subr.mxu0 %v39_v4  ;;  %384 = vmatprep.subr.mxu1 %v39_v4  ;;  %v28_v27 = vld [vmem:[%s586_s0 + $0x70] sm:$0xff]  ;;  %v21_v28 = vld [vmem:[%s586_s0 + $0x38] sm:$0xff]  ;;  %v281_v30 = vld [vmem:[%s587_s2] ss:$0 sm:$0xff] }
   0xb   :  { %337 = vmatpush3.msra.mxu0 %v39_v4  ;;  %398 = vmatpush3.msra.mxu1 %v39_v4  ;;  %v29_v29 = vld [vmem:[%s586_s0 + $0x78] sm:$0xff] }
   0xc   :  { %338 = vmatprep.subr.mxu0 %v38_v5  ;;  %385 = vmatprep.subr.mxu1 %v38_v5 }
   0xd   :  { %339 = vmatpush3.msra.mxu0 %v38_v5  ;;  %399 = vmatpush3.msra.mxu1 %v38_v5 }
   0xe   :  { %340 = vmatprep.subr.mxu0 %v37_v6  ;;  %386 = vmatprep.subr.mxu1 %v37_v6 }
   0xf   :  { %341 = vmatpush3.msra.mxu0 %v37_v6  ;;  %400 = vmatpush3.msra.mxu1 %v37_v6 }
  0x10   :  { %342 = vmatprep.subr.mxu0 %v36_v7  ;;  %387 = vmatprep.subr.mxu1 %v36_v7 }
  0x11   :  { %343 = vmatpush3.msra.mxu0 %v36_v7  ;;  %401 = vmatpush3.msra.mxu1 %v36_v7 }
  0x12   :  { %344 = vmatprep.subr.mxu0 %v35_v8  ;;  %388 = vmatprep.subr.mxu1 %v35_v8 }
  0x13   :  { %345 = vmatpush3.msra.mxu0 %v35_v8  ;;  %402 = vmatpush3.msra.mxu1 %v35_v8 }
  0x14   :  { %346 = vmatprep.subr.mxu0 %v34_v9  ;;  %389 = vmatprep.subr.mxu1 %v34_v9 }
  0x15   :  { %347 = vmatpush3.msra.mxu0 %v34_v9  ;;  %403 = vmatpush3.msra.mxu1 %v34_v9 }
  0x16   :  { %348 = vmatprep.subr.mxu0 %v33_v10  ;;  %390 = vmatprep.subr.mxu1 %v33_v10 }
  0x17   :  { %349 = vmatpush3.msra.mxu0 %v33_v10  ;;  %404 = vmatpush3.msra.mxu1 %v33_v10 }
  0x18   :  { %350 = vmatprep.subr.mxu0 %v32_v11  ;;  %391 = vmatprep.subr.mxu1 %v32_v11 }
  0x19   :  { %351 = vmatpush3.msra.mxu0 %v32_v11  ;;  %405 = vmatpush3.msra.mxu1 %v32_v11 }
  0x1a   :  { %352 = vmatprep.subr.mxu0 %v31_v12  ;;  %392 = vmatprep.subr.mxu1 %v31_v12 }
  0x1b   :  { %353 = vmatpush3.msra.mxu0 %v31_v12  ;;  %406 = vmatpush3.msra.mxu1 %v31_v12 }
  0x1c   :  { %354 = vmatprep.subr.mxu0 %v30_v13  ;;  %393 = vmatprep.subr.mxu1 %v30_v13 }
  0x1d   :  { %355 = vmatpush3.msra.mxu0 %v30_v13  ;;  %407 = vmatpush3.msra.mxu1 %v30_v13 }
  0x1e   :  { %356 = vmatprep.mubr.msk.f32.mxu0 %vm51_vm0, %v14_v14  ;;  %368 = vmatprep.mubr.msk.f32.mxu1 %vm51_vm0, %v22_v15 }
  0x1f   :  { %357 = vmatmul.mubr.msk.f32.vlgmr.msra.gmra.mxu0 %vm51_vm0, %v15_v16  ;;  %369 = vmatmul.mubr.msk.f32.vlgmr.msra.gmra.mxu1 %vm51_vm0, %v23_v17 }
  0x20   :  { %359 = vmatprep.mubr.msk.f32.mxu0 %vm51_vm0, %v16_v18  ;;  %371 = vmatprep.mubr.msk.f32.mxu1 %vm51_vm0, %v24_v19 }
  0x23   :  { %360 = vmatmul.mubr.msk.f32.gmra.mxu0 %vm51_vm0, %v17_v20  ;;  %372 = vmatmul.mubr.msk.f32.gmra.mxu1 %vm51_vm0, %v25_v21 }
  0x24   :  { %362 = vmatprep.mubr.msk.f32.mxu0 %vm51_vm0, %v18_v22  ;;  %374 = vmatprep.mubr.msk.f32.mxu1 %vm51_vm0, %v26_v23 }
  0x27   :  { %363 = vmatmul.mubr.msk.f32.gmra.mxu0 %vm51_vm0, %v19_v24  ;;  %375 = vmatmul.mubr.msk.f32.gmra.mxu1 %vm51_vm0, %v27_v25 }
  0x28   :  { %365 = vmatprep.mubr.msk.f32.mxu0 %vm51_vm0, %v20_v26  ;;  %377 = vmatprep.mubr.msk.f32.mxu1 %vm51_vm0, %v28_v27 }
  0x2b   :  { %366 = vmatmul.mubr.msk.f32.gmra.mxu0 %vm51_vm0, %v21_v28  ;;  %378 = vmatmul.mubr.msk.f32.gmra.mxu1 %vm51_vm0, %v29_v29 }
  0xdf   :  { %v358_v31 = vpop.f32.mrf.mxu0  ;;  %v370_v32 = vpop.f32.mrf.mxu1 }
  0xe0   :  { %v172_v33 = vadd.f32 %v358_v31, %v281_v30  ;;  %v212_v34 = vadd.f32 %v370_v32, %v281_v30 }
  0xe1   :  { %v166_v35 = vpop.f32.mrf.mxu0  ;;  %v206_v36 = vpop.f32.mrf.mxu1 }
  0xe2   :  { %v246_v37 = vmax.f32 %v172_v33, 0.0  ;;  %v254_v38 = vmax.f32 %v212_v34, 0.0  ;;  %v167_v39 = vadd.f32 %v281_v30, %v166_v35  ;;  %v207_v40 = vadd.f32 %v281_v30, %v206_v36 }
  0xe3   :  { %v361_v41 = vpop.f32.mrf.mxu0  ;;  %v373_v42 = vpop.f32.mrf.mxu1 }
  0xe4   :  { %262 = vst [vmem:[%s588_s3 + $0x8] sm:$0xff] %v246_v37  ;;  %270 = vst [vmem:[%s588_s3 + $0x48] sm:$0xff] %v254_v38  ;;  %v245_v43 = vmax.f32 %v167_v39, 0.0  ;;  %v253_v44 = vmax.f32 %v207_v40, 0.0  ;;  %v182_v45 = vadd.f32 %v361_v41, %v281_v30  ;;  %v222_v46 = vadd.f32 %v373_v42, %v281_v30 }
  0xe5   :  { %v176_v47 = vpop.f32.mrf.mxu0  ;;  %v216_v48 = vpop.f32.mrf.mxu1 }
  0xe6   :  { %261 = vst [vmem:[%s588_s3] sm:$0xff] %v245_v43  ;;  %269 = vst [vmem:[%s588_s3 + $0x40] sm:$0xff] %v253_v44  ;;  %v248_v49 = vmax.f32 %v182_v45, 0.0  ;;  %v256_v50 = vmax.f32 %v222_v46, 0.0  ;;  %v177_v51 = vadd.f32 %v281_v30, %v176_v47  ;;  %v217_v52 = vadd.f32 %v281_v30, %v216_v48 }
  0xe7   :  { %v364_v53 = vpop.f32.mrf.mxu0  ;;  %v376_v54 = vpop.f32.mrf.mxu1 }
  0xe8   :  { %264 = vst [vmem:[%s588_s3 + $0x18] sm:$0xff] %v248_v49  ;;  %272 = vst [vmem:[%s588_s3 + $0x58] sm:$0xff] %v256_v50  ;;  %v247_v55 = vmax.f32 %v177_v51, 0.0  ;;  %v255_v56 = vmax.f32 %v217_v52, 0.0  ;;  %v192_v57 = vadd.f32 %v364_v53, %v281_v30  ;;  %v232_v58 = vadd.f32 %v376_v54, %v281_v30 }
  0xe9   :  { %v186_v59 = vpop.f32.mrf.mxu0  ;;  %v226_v60 = vpop.f32.mrf.mxu1 }
  0xea   :  { %263 = vst [vmem:[%s588_s3 + $0x10] sm:$0xff] %v247_v55  ;;  %271 = vst [vmem:[%s588_s3 + $0x50] sm:$0xff] %v255_v56  ;;  %v250_v61 = vmax.f32 %v192_v57, 0.0  ;;  %v258_v62 = vmax.f32 %v232_v58, 0.0  ;;  %v187_v63 = vadd.f32 %v281_v30, %v186_v59  ;;  %v227_v0 = vadd.f32 %v281_v30, %v226_v60 }
  0xeb   :  { %v367_v1 = vpop.f32.mrf.mxu0  ;;  %v379_v2 = vpop.f32.mrf.mxu1 }
  0xec   :  { %266 = vst [vmem:[%s588_s3 + $0x28] sm:$0xff] %v250_v61  ;;  %274 = vst [vmem:[%s588_s3 + $0x68] sm:$0xff] %v258_v62  ;;  %v249_v3 = vmax.f32 %v187_v63, 0.0  ;;  %v257_v4 = vmax.f32 %v227_v0, 0.0  ;;  %v202_v5 = vadd.f32 %v367_v1, %v281_v30  ;;  %v242_v6 = vadd.f32 %v379_v2, %v281_v30 }
  0xed   :  { %v196_v7 = vpop.f32.mrf.mxu0  ;;  %v236_v8 = vpop.f32.mrf.mxu1 }
  0xee   :  { %265 = vst [vmem:[%s588_s3 + $0x20] sm:$0xff] %v249_v3  ;;  %273 = vst [vmem:[%s588_s3 + $0x60] sm:$0xff] %v257_v4  ;;  %v252_v9 = vmax.f32 %v202_v5, 0.0  ;;  %v260_v10 = vmax.f32 %v242_v6, 0.0  ;;  %v197_v11 = vadd.f32 %v281_v30, %v196_v7  ;;  %v237_v12 = vadd.f32 %v281_v30, %v236_v8 }
  0xf0   :  { %268 = vst [vmem:[%s588_s3 + $0x38] sm:$0xff] %v252_v9  ;;  %276 = vst [vmem:[%s588_s3 + $0x78] sm:$0xff] %v260_v10  ;;  %v251_v13 = vmax.f32 %v197_v11, 0.0  ;;  %v259_v14 = vmax.f32 %v237_v12, 0.0 }
  0xf2   :  { %267 = vst [vmem:[%s588_s3 + $0x30] sm:$0xff] %v251_v13  ;;  %275 = vst [vmem:[%s588_s3 + $0x70] sm:$0xff] %v259_v14 }

</bundles_post_ra>
